<compile_context>
chip_gen: v7x
topology: tpu7x:2x2x1
jax: 0.10.0
libtpu: 0.0.40
codegen_flags: <defaults>
</compile_context>

<pallas_src>
import functools

import jax
import jax.numpy as jnp
from jax.experimental import pallas as pl
from jax.experimental.pallas import tpu as pltpu


def _round_up(n, m):
    return ((n + m - 1) // m) * m


def _pad2(a, rows, cols):
    r, c = a.shape
    return jnp.pad(a, ((0, rows - r), (0, cols - c)))


def mlp_kernel(x_ref, w1_ref, b1_ref, w2t_ref, b2_ref, o_ref):
    # x: [TILE_B, IN_PAD] f32, w1: [IN_PAD, HID_PAD] bf16 (resident),
    # b1: [1, HID_PAD] f32, w2t: [OUT_F, HID_PAD] f32, b2: [1, OUT_F] f32,
    # o: [TILE_B, OUT_F].
    x = x_ref[...].astype(jnp.bfloat16)          # cast in-kernel; x stays f32 in HBM
    w1 = w1_ref[...]                             # already bf16 (host-side cast)

    # Hidden layer on the MXU: bf16 inputs, f32 accumulation; bias + sigmoid f32.
    h = jnp.dot(x, w1, preferred_element_type=jnp.float32) + b1_ref[...]
    h = jax.nn.sigmoid(h)                        # exp/recip on the EUP slot

    # Output layer: out_f is tiny (1 here), so VPU multiply + XLU lane-reduce in
    # f32 instead of a padded MXU matmul; produces the narrow result directly.
    # Zero-padded w2 columns cancel the sigmoid(0)=0.5 padded hidden lanes.
    w2t = w2t_ref[...]                           # [OUT_F, HID_PAD] f32
    cols = [
        jnp.sum(h * w2t[o][None, :], axis=-1, keepdims=True)   # [TILE_B, 1] f32
        for o in range(w2t.shape[0])
    ]
    y = cols[0] if len(cols) == 1 else jnp.concatenate(cols, axis=-1)
    o_ref[...] = (y + b2_ref[...]).astype(o_ref.dtype)


@functools.partial(jax.jit, static_argnames=("tile_b",))
def mlp_forward(x, w1, b1, w2, b2, *, tile_b=2048):
    """y = sigmoid(x @ w1 + b1) @ w2 + b2, weights stored as [in, out]."""
    B, in_f = x.shape
    hid = w1.shape[1]
    out_f = w2.shape[1]

    # (8,128)-aligned padded shapes for the MXU-facing operands only.
    IN_PAD = _round_up(max(in_f, 8), 8)
    HID_PAD = _round_up(max(hid, 128), 128)

    # Batch tiling: pad B only to the 8-row boundary, then split into an even
    # number of tiles (grid divides exactly; at most num_tiles*8 wasted rows).
    # Force >=2 tiles for large batches so v7x's two TensorCores both get work.
    B_PAD8 = _round_up(max(B, 8), 8)
    num_tiles = pl.cdiv(B_PAD8, tile_b)
    if B_PAD8 >= 2048:
        num_tiles = max(num_tiles, 2)
    tile_b_eff = _round_up(pl.cdiv(B_PAD8, num_tiles), 8)
    B_PAD = num_tiles * tile_b_eff

    x_p = _pad2(x, B_PAD, IN_PAD)
    w1_p = _pad2(w1, IN_PAD, HID_PAD).astype(jnp.bfloat16)   # bf16 host-side
    b1_p = _pad2(b1.reshape(1, -1), 1, HID_PAD)              # f32
    w2t_p = _pad2(w2.T, out_f, HID_PAD)                      # [out_f, HID_PAD] f32
    b2_p = b2.reshape(1, -1)                                 # [1, out_f] f32

    out_p = pl.pallas_call(
        mlp_kernel,
        out_shape=jax.ShapeDtypeStruct((B_PAD, out_f), x.dtype),
        grid=(num_tiles,),
        in_specs=[
            pl.BlockSpec((tile_b_eff, IN_PAD), lambda i: (i, 0)),   # x: batch-tiled
            pl.BlockSpec((IN_PAD, HID_PAD), lambda i: (0, 0)),      # weights resident
            pl.BlockSpec((1, HID_PAD), lambda i: (0, 0)),
            pl.BlockSpec((out_f, HID_PAD), lambda i: (0, 0)),
            pl.BlockSpec((1, out_f), lambda i: (0, 0)),
        ],
        # Narrow output block: last dim equals full array extent (out_f), so the
        # (8,128) rule is satisfied and only the real columns hit HBM.
        out_specs=pl.BlockSpec((tile_b_eff, out_f), lambda i: (i, 0)),
        compiler_params=pltpu.CompilerParams(
            dimension_semantics=("parallel",),   # batch tiles shard across TCs on v7x
            vmem_limit_bytes=32 * 1024 * 1024,
        ),
    )(x_p, w1_p, b1_p, w2t_p, b2_p)

    return out_p[:B]   # strip batch padding; columns are already exact


def init_params(key, input_size=3, hidden_size=10, output_size=1):
    # Deterministic init mimicking nn.Linear's uniform(-1/sqrt(fan_in), +1/sqrt(fan_in)).
    k1, k2, k3, k4 = jax.random.split(key, 4)
    bound1 = 1.0 / jnp.sqrt(input_size)
    bound2 = 1.0 / jnp.sqrt(hidden_size)
    # stored transposed relative to PyTorch's [out, in] convention: [in, out]
    w1 = jax.random.uniform(k1, (input_size, hidden_size), jnp.float32, -bound1, bound1)
    b1 = jax.random.uniform(k2, (1, hidden_size), jnp.float32, -bound1, bound1)
    w2 = jax.random.uniform(k3, (hidden_size, output_size), jnp.float32, -bound2, bound2)
    b2 = jax.random.uniform(k4, (1, output_size), jnp.float32, -bound2, bound2)
    return w1, b1, w2, b2


if __name__ == "__main__":
    key = jax.random.PRNGKey(0)
    kx, kp = jax.random.split(key)

    B, IN, HID, OUT = 8, 3, 10, 1
    x = jax.random.normal(kx, (B, IN), jnp.float32)
    w1, b1, w2, b2 = init_params(kp, IN, HID, OUT)

    out = mlp_forward(x, w1, b1, w2, b2)
    jax.block_until_ready(out)
    assert out.shape == (B, OUT)

    # Strict check against a matched-precision reference (bf16 first matmul with
    # f32 accumulation, second layer fully f32 — same as the kernel).
    xb = x.astype(jnp.bfloat16)
    w1b = w1.astype(jnp.bfloat16)
    h_ref = jax.nn.sigmoid(jnp.dot(xb, w1b, preferred_element_type=jnp.float32) + b1)
    ref_matched = h_ref @ w2 + b2
    assert jnp.allclose(out, ref_matched, atol=1e-5, rtol=1e-5)

    # Loose check against the full-f32 PyTorch-semantics reference.
    ref_f32 = jax.nn.sigmoid(x @ w1 + b1) @ w2 + b2
    assert jnp.allclose(out, ref_f32, atol=3e-2, rtol=3e-2)

    print("KERNEL_OK")
</pallas_src>

<mosaic_0001>
module attributes {stable_mosaic.version = 11 : i64} {
  func.func @mlp_kernel(%arg0: i32, %arg1: memref<8x8xf32, #tpu.memory_space<vmem>>, %arg2: memref<8x128xbf16, #tpu.memory_space<vmem>>, %arg3: memref<1x128xf32, #tpu.memory_space<vmem>>, %arg4: memref<1x128xf32, #tpu.memory_space<vmem>>, %arg5: memref<1x1xf32, #tpu.memory_space<vmem>>, %arg6: memref<8x1xf32, #tpu.memory_space<vmem>>) attributes {dimension_semantics = [#tpu.dimension_semantics<parallel>], iteration_bounds = array<i64: 1>, scalar_prefetch = 0 : i64, scratch_operands = 0 : i64, tpu.core_type = #tpu.core_type<tc>, window_params = [{transform_indices = @transform_0, window_bounds = array<i64: 8, 8>}, {pipeline_mode = #tpu.pipeline_mode<synchronous>, transform_indices = @transform_1, window_bounds = array<i64: 8, 128>}, {pipeline_mode = #tpu.pipeline_mode<synchronous>, transform_indices = @transform_2, window_bounds = array<i64: 1, 128>}, {pipeline_mode = #tpu.pipeline_mode<synchronous>, transform_indices = @transform_3, window_bounds = array<i64: 1, 128>}, {pipeline_mode = #tpu.pipeline_mode<synchronous>, transform_indices = @transform_4, window_bounds = array<i64: 1, 1>}, {transform_indices = @transform_5, window_bounds = array<i64: 8, 1>}]} {
    %c0 = arith.constant 0 : index
    %c0_0 = arith.constant 0 : index
    %0 = vector.load %arg1[%c0, %c0_0] : memref<8x8xf32, #tpu.memory_space<vmem>>, vector<8x8xf32>
    %1 = arith.truncf %0 : vector<8x8xf32> to vector<8x8xbf16>
    %c0_1 = arith.constant 0 : index
    %c0_2 = arith.constant 0 : index
    %2 = vector.load %arg2[%c0_1, %c0_2] : memref<8x128xbf16, #tpu.memory_space<vmem>>, vector<8x128xbf16>
    %cst = arith.constant dense<0.000000e+00> : vector<8x128xf32>
    %3 = tpu.matmul %1, %2, %cst {dimension_numbers = #tpu.dot_dimension_numbers<[1], [0], [0], [1], [0, 0, 1, 1], [], []>} : vector<8x8xbf16>, vector<8x128xbf16>, vector<8x128xf32> -> vector<8x128xf32>
    %c0_3 = arith.constant 0 : index
    %c0_4 = arith.constant 0 : index
    %4 = vector.load %arg3[%c0_3, %c0_4] : memref<1x128xf32, #tpu.memory_space<vmem>>, vector<1x128xf32>
    %5 = vector.broadcast %4 : vector<1x128xf32> to vector<8x128xf32>
    %6 = arith.addf %3, %5 : vector<8x128xf32>
    %7 = arith.negf %6 : vector<8x128xf32>
    %8 = math.exp %7 : vector<8x128xf32>
    %cst_5 = arith.constant 1.000000e+00 : f32
    %9 = vector.broadcast %cst_5 : f32 to vector<8x128xf32>
    %10 = arith.addf %9, %8 : vector<8x128xf32>
    %11 = arith.divf %9, %10 : vector<8x128xf32>
    %c0_6 = arith.constant 0 : index
    %c0_7 = arith.constant 0 : index
    %12 = vector.load %arg4[%c0_6, %c0_7] : memref<1x128xf32, #tpu.memory_space<vmem>>, vector<1x128xf32>
    %13 = vector.shape_cast %12 : vector<1x128xf32> to vector<128xf32>
    %14 = vector.shape_cast %13 : vector<128xf32> to vector<1x128xf32>
    %15 = vector.broadcast %14 : vector<1x128xf32> to vector<8x128xf32>
    %16 = arith.mulf %11, %15 : vector<8x128xf32>
    %cst_8 = arith.constant dense<0.000000e+00> : vector<8xf32>
    %17 = vector.multi_reduction <add>, %16, %cst_8 [1] : vector<8x128xf32> to vector<8xf32>
    %18 = vector.shape_cast %17 : vector<8xf32> to vector<8x1xf32>
    %c0_9 = arith.constant 0 : index
    %c0_10 = arith.constant 0 : index
    %19 = vector.load %arg5[%c0_9, %c0_10] : memref<1x1xf32, #tpu.memory_space<vmem>>, vector<1x1xf32>
    %20 = vector.broadcast %19 : vector<1x1xf32> to vector<8x1xf32>
    %21 = arith.addf %18, %20 : vector<8x1xf32>
    %c0_11 = arith.constant 0 : index
    %c0_12 = arith.constant 0 : index
    %22 = vector.load %arg6[%c0_11, %c0_12] : memref<8x1xf32, #tpu.memory_space<vmem>>, vector<8x1xf32>
    tpu.vector_store %arg6[%c0_11, %c0_12], %21 {strides = array<i32>} : memref<8x1xf32, #tpu.memory_space<vmem>>, vector<8x1xf32>,
    return
  }
  func.func @transform_0(%arg0: i32) -> (i32, i32) {
    %c0_i32 = arith.constant 0 : i32
    %c0_i32_0 = arith.constant 0 : i32
    return %arg0, %c0_i32 : i32, i32
  }
  func.func @transform_1(%arg0: i32) -> (i32, i32) {
    %c0_i32 = arith.constant 0 : i32
    %c0_i32_0 = arith.constant 0 : i32
    %c0_i32_1 = arith.constant 0 : i32
    return %c0_i32, %c0_i32_0 : i32, i32
  }
  func.func @transform_2(%arg0: i32) -> (i32, i32) {
    %c0_i32 = arith.constant 0 : i32
    %c0_i32_0 = arith.constant 0 : i32
    %c0_i32_1 = arith.constant 0 : i32
    return %c0_i32, %c0_i32_0 : i32, i32
  }
  func.func @transform_3(%arg0: i32) -> (i32, i32) {
    %c0_i32 = arith.constant 0 : i32
    %c0_i32_0 = arith.constant 0 : i32
    %c0_i32_1 = arith.constant 0 : i32
    return %c0_i32, %c0_i32_0 : i32, i32
  }
  func.func @transform_4(%arg0: i32) -> (i32, i32) {
    %c0_i32 = arith.constant 0 : i32
    %c0_i32_0 = arith.constant 0 : i32
    %c0_i32_1 = arith.constant 0 : i32
    return %c0_i32, %c0_i32_0 : i32, i32
  }
  func.func @transform_5(%arg0: i32) -> (i32, i32) {
    %c0_i32 = arith.constant 0 : i32
    %c0_i32_0 = arith.constant 0 : i32
    return %arg0, %c0_i32 : i32, i32
  }
}

</mosaic_0001>

<bundles_post_ra>
// kernel: mlp_forward.1
= control target key start
LH: loop header
LB: loop body
LE: loop exit
PB: predicated region body
PF: predicated region fallthrough
CT: control target
= control target key end

     0   :  { %vm37_vm0 = vcmask 1043456   ;;  %v130_v0 = vmov 0.0   ;;  %vm131_vm1 = vmmov 0   ;;  %vm33_vm2 = vcmask 64512   ;;  %s180_s1 = inlined_call_operand.vmem [shape: bf16[8,128], index: 1, kind: input, shape index: {}]   ;;  %s181_s0 = inlined_call_operand.vmem [shape: f32[8,8], index: 0, kind: input, shape index: {}]   ;;  %s182_s4 = inlined_call_operand.<no memory space> [shape: f32[1,1], index: 4, kind: input, shape index: {}]   ;;  %s183_s2 = inlined_call_operand.vmem [shape: f32[1,128], index: 2, kind: input, shape index: {}]   ;;  %s184_s3 = inlined_call_operand.vmem [shape: f32[1,128], index: 3, kind: input, shape index: {}]   ;;  %s185_s5 = inlined_call_operand.vmem [shape: f32[8,1], index: 5, kind: output, shape index: {}]  }
   0x1   :  { %118 = vmatprep.subr.bf16.mxu0 %v130_v0  ;;  %v25_v1 = vld [vmem:[%s180_s1] sm:$0xf]  ;;  %120 = vmatprep.mubr.msk.bf16.mxu0 %vm131_vm1, %v130_v0  ;;  %v10_v5 = vstv %s182_s4  ;;  %vm105_vm3 = vcmask 7168  }
   0x2   :  { %v23_v2 = vld [vmem:[%s181_s0] sm:$0xff]  ;;  %v39_v3 = vsel %vm37_vm0, %v25_v1, 0  ;;  %11 = vst [vmem:[#allocation2] sm:$0x1] %v10_v5 }
   0x3   :  { %v24_v4 = vpack.c.bf16 %v23_v2, %v23_v2  ;;  %119 = vmatpush3.bf16.msra.mxu0 %v39_v3  ;;  %v111_v6 = vld [vmem:[%s183_s2] ss:$0 sm:$0xff] }
   0x4   :  { %v114_v15 = vld [vmem:[%s184_s3] ss:$0 sm:$0xff] }
   0x6   :  { %121 = vmatmul.mubr.msk.bf16.vlgmr.msra.gmra.mrb[0].mxu0 %vm33_vm2, %v24_v4 }
   0x9   :  { %v115_v18 = vld [vmem:[#allocation2] ss:$0 sm:$0xff] }
  0xd9   :  { %v75_v7 = vpop.f32.mrb[0].mxu0 }
  0xda   :  { %v76_v8 = vadd.f32 %v111_v6, %v75_v7  ;;  %v122_v9 = vpop.f32.mrb[1].mxu0 }
  0xdb   :  { %v78_v10 = vpop.f32.mrb[2].mxu0 }
  0xdc   :  { %v113_v11 = vmul.f32 -1.442695, %v76_v8  ;;  %v123_v12 = vpop.f32.mrb[3].mxu0 }
  0xde   :  { %126 = vpow2.f32 %v113_v11 }
  0xe8   :  { %v127_v13 = vpop.eup %126 }
  0xe9   :  { %v84_v14 = vadd.f32 1.0, %v127_v13 }
  0xeb   :  { %128 = vrcp.f32 %v84_v14 }
  0xf5   :  { %v129_v16 = vpop.eup %128 }
  0xf6   :  { %v94_v17 = vmul.f32 %v129_v16, %v114_v15 }
  0xf8   :  { %95 = vadd.xlane.f32.xlu0 %v94_v17 }
 0x185   :  { %v96_v19 = vpop.xlane.xlu0 %95 }
 0x186   :  { %v104_v20 = vadd.f32 %v115_v18, %v96_v19 }
 0x188   :  { %106 = vst.msk [vmem:[%s185_s5] sm:$0xff] %vm105_vm3, %v104_v20 }

</bundles_post_ra>
